<compile_context>
chip_gen: v5e
topology: v5e:2x2
jax: 0.10.0
libtpu: 0.0.40
codegen_flags: <defaults>
</compile_context>

<pallas_src>
import functools

import jax
import jax.numpy as jnp
from jax.experimental import pallas as pl
from jax.experimental.pallas import tpu as pltpu


def _harmonic_kernel(x_ref, w_ref, b_ref, out_ref, *, max_T):
    x = x_ref[...]                                     # (TB, H) native dtype
    w = w_ref[...]                                     # (H, 3)
    b = b_ref[...]                                     # (1, 3)

    # Fused linear layers; f32 accumulation on the MXU.
    # z[:, 0] -> A logits, z[:, 1] -> B logits, z[:, 2] -> T logits
    z = jnp.dot(x, w, preferred_element_type=jnp.float32) + b.astype(jnp.float32)

    # Shared transcendental work (f32 epilogue, also required on v5e):
    #   softplus(z) = max(z, 0) + log1p(exp(-|z|))
    #   sigmoid(z)  = 1/(1+e)        if z >= 0
    #               = e/(1+e)        otherwise,   with e = exp(-|z|)
    e = jnp.exp(-jnp.abs(z))                           # one EUP exp per element
    sp = jnp.maximum(z, 0.0) + jnp.log1p(e)            # softplus
    inv = 1.0 / (1.0 + e)                              # one reciprocal per element
    sig = jnp.where(z >= 0.0, inv, e * inv)            # sigmoid (exp shared)
    sg = sig * max_T + 1.0

    # columns 0,1 -> softplus ; column 2 -> scaled sigmoid
    col = jax.lax.broadcasted_iota(jnp.int32, z.shape, 1)
    out_ref[...] = jnp.where(col < 2, sp, sg)


def _pick_batch_tile(batch, hidden, itemsize, vmem_budget_bytes=8 << 20):
    """Largest batch tile such that a double-buffered x block stays within a
    conservative per-buffer VMEM budget (safe on v7x's 64 MiB VMEM)."""
    tb = vmem_budget_bytes // max(1, 2 * hidden * itemsize)
    tb = int(max(8, min(tb, 2048, batch)))
    if tb != batch:
        tb = max(8, (tb // 8) * 8)      # sublane (8) constraint for partial tiles
    return tb


def harmonic_layer(x, w, b, *, max_T, block_batch=None):
    """x: (batch, hidden) f32/bf16, w: (hidden, 3), b: (3,).

    Returns the packed (batch, 3) f32 array [A | B | T]; slice once at the
    consumer if the (A, B, T) tuple is needed.
    """
    batch, hidden = x.shape
    b2d = jnp.asarray(b, jnp.float32).reshape(1, 3)
    w = jnp.asarray(w)

    if block_batch is None:
        tb = _pick_batch_tile(batch, hidden, x.dtype.itemsize)
    else:
        tb = int(block_batch)
        tb = min(tb, batch)
        if tb != batch:
            tb = max(8, (tb // 8) * 8)

    grid = (pl.cdiv(batch, tb),)

    cost = pl.CostEstimate(
        flops=2 * batch * hidden * 3 + 8 * batch * 3,
        transcendentals=3 * batch * 3,
        bytes_accessed=(batch * hidden * x.dtype.itemsize
                        + hidden * 3 * w.dtype.itemsize
                        + 3 * 4
                        + batch * 3 * 4),
    )

    out = pl.pallas_call(
        functools.partial(_harmonic_kernel, max_T=float(max_T)),
        out_shape=jax.ShapeDtypeStruct((batch, 3), jnp.float32),
        grid_spec=pltpu.PrefetchScalarGridSpec(
            num_scalar_prefetch=0,
            grid=grid,
            in_specs=[
                pl.BlockSpec((tb, hidden), lambda i: (i, 0)),   # streamed per block
                pl.BlockSpec((hidden, 3), lambda i: (0, 0)),    # resident
                pl.BlockSpec((1, 3), lambda i: (0, 0)),         # resident
            ],
            out_specs=pl.BlockSpec((tb, 3), lambda i: (i, 0)),
        ),
        compiler_params=pltpu.CompilerParams(
            dimension_semantics=("parallel",),        # megacore sharding on v7x
            vmem_limit_bytes=48 * 1024 * 1024,        # headroom under v7x's 64 MiB
        ),
        cost_estimate=cost,
    )(x, w, b2d)

    return out


def harmonic_layer_abt(x, w, b, *, max_T, block_batch=None):
    """Convenience wrapper matching the PyTorch module's (A, B, T) return.
    Slices the packed result exactly once at the consumer."""
    out = harmonic_layer(x, w, b, max_T=max_T, block_batch=block_batch)
    return out[:, 0:1], out[:, 1:2], out[:, 2:3]


def _init_params(key, hidden_nodes):
    """Deterministic init mimicking torch.nn.Linear default (uniform +-1/sqrt(fan_in))."""
    bound = 1.0 / jnp.sqrt(jnp.float32(hidden_nodes))
    kw, kb = jax.random.split(key)
    # stacked weights for layer_A, layer_B, layer_T -> (hidden, 3)
    w = jax.random.uniform(kw, (hidden_nodes, 3), jnp.float32, -bound, bound)
    b = jax.random.uniform(kb, (3,), jnp.float32, -bound, bound)
    return w, b


def _reference(x, w, b, max_T):
    z = x @ w + b[None, :]
    sp = jnp.logaddexp(z, 0.0)
    sg = jax.nn.sigmoid(z) * max_T + 1.0
    return sp[:, 0:1], sp[:, 1:2], sg[:, 2:3]


if __name__ == "__main__":
    # Small shapes consistent with the module defaults (hidden_nodes=50, max_T=100).
    # Note: at tiny sizes plain fused XLA would beat a custom kernel; the Pallas
    # path is intended for large-batch use but is exercised here for correctness.
    hidden_nodes = 50
    batch = 64
    max_T = 100

    key = jax.random.PRNGKey(0)
    kx, kp = jax.random.split(key)
    x = jax.random.normal(kx, (batch, hidden_nodes), jnp.float32)
    w, b = _init_params(kp, hidden_nodes)

    # Force a small batch tile so the multi-step, double-buffered grid path is
    # exercised even at this toy size (grid = (4,)).
    A, B, T = harmonic_layer_abt(x, w, b, max_T=max_T, block_batch=16)
    jax.block_until_ready((A, B, T))

    A_ref, B_ref, T_ref = _reference(x, w, b, max_T)
    assert A.shape == (batch, 1) and B.shape == (batch, 1) and T.shape == (batch, 1)
    assert jnp.allclose(A, A_ref, atol=1e-5, rtol=1e-5)
    assert jnp.allclose(B, B_ref, atol=1e-5, rtol=1e-5)
    assert jnp.allclose(T, T_ref, atol=1e-4, rtol=1e-5)

    print("KERNEL_OK")
</pallas_src>

<mosaic_0001>
module attributes {stable_mosaic.version = 11 : i64} {
  func.func @_harmonic_kernel(%arg0: i32, %arg1: memref<16x50xf32, #tpu.memory_space<vmem>>, %arg2: memref<50x3xf32, #tpu.memory_space<vmem>>, %arg3: memref<1x3xf32, #tpu.memory_space<vmem>>, %arg4: memref<16x3xf32, #tpu.memory_space<vmem>>) attributes {dimension_semantics = [#tpu.dimension_semantics<parallel>], iteration_bounds = array<i64: 4>, scalar_prefetch = 0 : i64, scratch_operands = 0 : i64, tpu.core_type = #tpu.core_type<tc>, window_params = [{transform_indices = @transform_0, window_bounds = array<i64: 16, 50>}, {pipeline_mode = #tpu.pipeline_mode<synchronous>, transform_indices = @transform_1, window_bounds = array<i64: 50, 3>}, {pipeline_mode = #tpu.pipeline_mode<synchronous>, transform_indices = @transform_2, window_bounds = array<i64: 1, 3>}, {transform_indices = @transform_3, window_bounds = array<i64: 16, 3>}]} {
    %c0 = arith.constant 0 : index
    %c0_0 = arith.constant 0 : index
    %0 = vector.load %arg1[%c0, %c0_0] : memref<16x50xf32, #tpu.memory_space<vmem>>, vector<16x50xf32>
    %c0_1 = arith.constant 0 : index
    %c0_2 = arith.constant 0 : index
    %1 = vector.load %arg2[%c0_1, %c0_2] : memref<50x3xf32, #tpu.memory_space<vmem>>, vector<50x3xf32>
    %c0_3 = arith.constant 0 : index
    %c0_4 = arith.constant 0 : index
    %2 = vector.load %arg3[%c0_3, %c0_4] : memref<1x3xf32, #tpu.memory_space<vmem>>, vector<1x3xf32>
    %cst = arith.constant dense<0.000000e+00> : vector<16x3xf32>
    %3 = tpu.matmul %0, %1, %cst {dimension_numbers = #tpu.dot_dimension_numbers<[1], [0], [0], [1], [0, 0, 1, 1], [], []>} : vector<16x50xf32>, vector<50x3xf32>, vector<16x3xf32> -> vector<16x3xf32>
    %4 = vector.broadcast %2 : vector<1x3xf32> to vector<16x3xf32>
    %5 = arith.addf %3, %4 : vector<16x3xf32>
    %6 = math.absf %5 : vector<16x3xf32>
    %cst_5 = arith.constant 0.000000e+00 : f32
    %7 = vector.broadcast %cst_5 : f32 to vector<16x3xf32>
    %8 = arith.subf %7, %6 : vector<16x3xf32>
    %9 = math.exp %8 : vector<16x3xf32>
    %cst_6 = arith.constant 0.000000e+00 : f32
    %10 = vector.broadcast %cst_6 : f32 to vector<16x3xf32>
    %11 = arith.maximumf %5, %10 : vector<16x3xf32>
    %12 = math.log1p %9 : vector<16x3xf32>
    %13 = arith.addf %11, %12 : vector<16x3xf32>
    %cst_7 = arith.constant 1.000000e+00 : f32
    %14 = vector.broadcast %cst_7 : f32 to vector<16x3xf32>
    %15 = arith.addf %14, %9 : vector<16x3xf32>
    %cst_8 = arith.constant 1.000000e+00 : f32
    %16 = vector.broadcast %cst_8 : f32 to vector<16x3xf32>
    %17 = arith.divf %16, %15 : vector<16x3xf32>
    %cst_9 = arith.constant 0.000000e+00 : f32
    %18 = vector.broadcast %cst_9 : f32 to vector<16x3xf32>
    %19 = arith.cmpf oge, %5, %18 : vector<16x3xf32>
    %20 = arith.mulf %9, %17 : vector<16x3xf32>
    %21 = arith.select %19, %17, %20 : vector<16x3xi1>, vector<16x3xf32>
    %cst_10 = arith.constant 1.000000e+02 : f32
    %22 = vector.broadcast %cst_10 : f32 to vector<16x3xf32>
    %23 = arith.mulf %21, %22 : vector<16x3xf32>
    %cst_11 = arith.constant 1.000000e+00 : f32
    %24 = vector.broadcast %cst_11 : f32 to vector<16x3xf32>
    %25 = arith.addf %23, %24 : vector<16x3xf32>
    %26 = tpu.iota {dimensions = array<i32: 1>} : vector<16x3xi32>
    %c2_i32 = arith.constant 2 : i32
    %27 = vector.broadcast %c2_i32 : i32 to vector<16x3xi32>
    %28 = arith.cmpi slt, %26, %27 : vector<16x3xi32>
    %29 = arith.select %28, %13, %25 : vector<16x3xi1>, vector<16x3xf32>
    %c0_12 = arith.constant 0 : index
    %c0_13 = arith.constant 0 : index
    %30 = vector.load %arg4[%c0_12, %c0_13] : memref<16x3xf32, #tpu.memory_space<vmem>>, vector<16x3xf32>
    tpu.vector_store %arg4[%c0_12, %c0_13], %29 {strides = array<i32>} : memref<16x3xf32, #tpu.memory_space<vmem>>, vector<16x3xf32>,
    return
  }
  func.func @transform_0(%arg0: i32) -> (i32, i32) {
    %c0_i32 = arith.constant 0 : i32
    %c0_i32_0 = arith.constant 0 : i32
    return %arg0, %c0_i32 : i32, i32
  }
  func.func @transform_1(%arg0: i32) -> (i32, i32) {
    %c0_i32 = arith.constant 0 : i32
    %c0_i32_0 = arith.constant 0 : i32
    %c0_i32_1 = arith.constant 0 : i32
    return %c0_i32, %c0_i32_0 : i32, i32
  }
  func.func @transform_2(%arg0: i32) -> (i32, i32) {
    %c0_i32 = arith.constant 0 : i32
    %c0_i32_0 = arith.constant 0 : i32
    %c0_i32_1 = arith.constant 0 : i32
    return %c0_i32, %c0_i32_0 : i32, i32
  }
  func.func @transform_3(%arg0: i32) -> (i32, i32) {
    %c0_i32 = arith.constant 0 : i32
    %c0_i32_0 = arith.constant 0 : i32
    return %arg0, %c0_i32 : i32, i32
  }
}

</mosaic_0001>

<bundles_post_ra>
// kernel: tpu_custom_call.1
= control target key start
LH: loop header
LB: loop body
LE: loop exit
PB: predicated region body
PF: predicated region fallthrough
CT: control target
= control target key end

     0   :  { %s427_s12 = smov 0   ;;  %s492_s0 = inlined_call_operand.vmem [shape: f32[64,50], index: 0, kind: input, shape index: {}]   ;;  %s493_s1 = inlined_call_operand.vmem [shape: f32[50,3], index: 1, kind: input, shape index: {}]   ;;  %s494_s2 = inlined_call_operand.vmem [shape: f32[1,3], index: 2, kind: input, shape index: {}]   ;;  %s495_s3 = inlined_call_operand.vmem [shape: f32[64,3], index: 3, kind: output, shape index: {}]  }
   0x1 LB: > { %s357_s13 = sadd.s32 4294967295, %s405_s12   ;;  %p361_p0 = scmp.ge.s32.totalorder %s405_s12, 1  ;;  %s405_s12 = sphi %s427_s12, %s13_s12  }
   0x2   : > { %p138_p1 = scmp.lt.s32.totalorder %s405_s12, 5 }
   0x4   : > { %p139_p2 = pnand %p361_p0, %p138_p1 }
   0x5   : > { %s362_s18 = sshll.u32 (!%p139_p2), %s357_s13, 1 }
   0x6   : > { %142 = sbr.rel (%p139_p2) target bundleno = 195 (0xc3), region = 32  ;;  %p163_p3 = scmp.lt.s32.totalorder (!%p139_p2), %s362_s18, 7 }
   0xb   : > { %v182_v0 = vld [vmem:[%s493_s1 + $0x30] sm:$0x3]  ;;  %vm194_vm0 = vcmask 1041408   ;;  %v181_v1 = vld [vmem:[%s493_s1 + $0x28] sm:$0xff]  ;;  %v180_v2 = vld [vmem:[%s493_s1 + $0x20] sm:$0xff]  ;;  %s499_s18 = smov (!%p163_p3, %s362_s18), 7  ;;  %v293_v28 = vlaneseq }
   0xc   : > { %366 = vmatpush.msk.msra.mxu0 %vm194_vm0, %v182_v0  ;;  %371 = vmatpush.msk.msra.mxu1 %vm194_vm0, %v182_v0  ;;  %v179_v3 = vld [vmem:[%s493_s1 + $0x18] sm:$0xff]  ;;  %s363_s23 = sshll.u32 %s499_s18, 3  ;;  %v178_v4 = vld [vmem:[%s493_s1 + $0x10] sm:$0xff]  ;;  %v177_v5 = vld [vmem:[%s493_s1 + $0x8] sm:$0xff]  ;;  %vm187_vm1 = vcmask 408576   ;;  %vm298_vm15 = vcmask 23552  }
   0xd   : > { %s166_s30 = scalar_lea.vmem %s492_s0, %s363_s23  ;;  %v176_v6 = vld [vmem:[%s493_s1] sm:$0xff]  ;;  %v294_v38 = vand.u32 127, %v293_v28  ;;  %s172_s10 = scalar_lea.vmem %s495_s3, %s363_s23 }
   0xe   : > { %208 = vmatpush.msra.mxu0 %v181_v1  ;;  %372 = vmatpush.msra.mxu1 %v181_v1  ;;  %v174_v7 = vld [vmem:[%s166_s30] sm:$0xff]  ;;  %v175_v8 = vld [vmem:[%s166_s30 + $0x8] sm:$0xff] }
   0xf   : > { %v386_v9 = vld [vmem:[%s494_s2] ss:$0 sm:$0xff]  ;;  %vm295_vm14 = vcmp.lt.s32.totalorder %v294_v38, 2 }
  0x10   : > { %209 = vmatpush.msra.mxu0 %v180_v2  ;;  %373 = vmatpush.msra.mxu1 %v180_v2 }
  0x12   : > { %210 = vmatpush.msra.mxu0 %v179_v3  ;;  %374 = vmatpush.msra.mxu1 %v179_v3 }
  0x14   : > { %211 = vmatpush.msra.mxu0 %v178_v4  ;;  %375 = vmatpush.msra.mxu1 %v178_v4 }
  0x16   : > { %212 = vmatpush.msra.mxu0 %v177_v5  ;;  %376 = vmatpush.msra.mxu1 %v177_v5 }
  0x18   : > { %213 = vmatpush.msra.mxu0 %v176_v6  ;;  %377 = vmatpush.msra.mxu1 %v176_v6 }
  0x19   : > { %367 = vmatmul.msk.f32.vlgmr.msra.gmra.mxu0 %vm187_vm1, %v174_v7  ;;  %368 = vmatmul.msk.f32.vlgmr.msra.gmra.mxu1 %vm187_vm1, %v175_v8 }
  0x96   : > { %v215_v10 = vpop.f32.mrf.mxu0  ;;  %v218_v11 = vpop.f32.mrf.mxu1 }
  0x97   : > { %v467_v12 = vadd.f32 %v386_v9, %v215_v10  ;;  %v469_v13 = vadd.f32 %v386_v9, %v218_v11 }
  0x99   : > { %v221_v14 = vand.u32 2147483647, %v467_v12  ;;  %v222_v15 = vand.u32 2147483647, %v469_v13  ;;  %vm283_vm11 = vcmp.ge.f32.partialorder %v467_v12, 0.0  ;;  %v229_v63 = vmax.f32 %v467_v12, 0.0 }
  0x9a   : > { %vm284_vm13 = vcmp.ge.f32.partialorder %v469_v13, 0.0  ;;  %v230_v1 = vmax.f32 %v469_v13, 0.0 }
  0x9b   : > { %v223_v16 = vsub.f32 0.0, %v221_v14  ;;  %v224_v17 = vsub.f32 0.0, %v222_v15 }
  0x9d   : > { %v225_v18 = vmul.f32 1.442695, %v223_v16  ;;  %v227_v19 = vmul.f32 1.442695, %v224_v17 }
  0x9f   : > { %387 = vpow2.f32 %v225_v18 }
  0xa0   : > { %389 = vpow2.f32 %v227_v19 }
  0xa5   : > { %v388_v20 = vpop.eup %387 }
  0xa6   : > { %v390_v21 = vpop.eup %389  ;;  %v231_v22 = vadd.f32 1.0, %v388_v20  ;;  %v234_v27 = vmul.f32 -0.5, %v388_v20  ;;  %v237_v44 = vand.u32 2147483647, %v388_v20 }
  0xa7   : > { %v240_v23 = vadd.f32 1.0, %v390_v21  ;;  %v243_v32 = vmul.f32 -0.5, %v390_v21  ;;  %v246_v52 = vand.u32 2147483647, %v390_v21 }
  0xa8   : > { %391 = vrcp.f32 %v231_v22  ;;  %v264_v31 = vand.u32 2147483648, %v231_v22  ;;  %v262_v34 = vand.u32 2147483647, %v231_v22  ;;  %v235_v37 = vadd.f32 1.0, %v234_v27 }
  0xa9   : > { %393 = vrcp.f32 %v240_v23  ;;  %vm258_vm3 = vweird.f32 %v231_v22  ;;  %v279_v39 = vand.u32 2147483648, %v240_v23  ;;  %v277_v42 = vand.u32 2147483647, %v240_v23 }
  0xaa   : > { %395 = vlog2.f32 %v231_v22  ;;  %v265_v45 = vor.u32 1.1754944e-38, %v264_v31  ;;  %v244_v46 = vadd.f32 1.0, %v243_v32  ;;  %vm273_vm6 = vweird.f32 %v240_v23 }
  0xab   : > { %397 = vlog2.f32 %v240_v23  ;;  %vm263_vm7 = vcmp.eq.f32.partialorder %v262_v34, 8.507059e+37  ;;  %v236_v50 = vmul.f32 %v388_v20, %v235_v37  ;;  %v280_v53 = vor.u32 1.1754944e-38, %v279_v39 }
  0xac   : > { %vm278_vm9 = vcmp.eq.f32.partialorder %v277_v42, 8.507059e+37  ;;  %vm474_vm10 = vcmp.lt.f32.partialorder %v237_v44, 0.0004427343  ;;  %v245_v61 = vmul.f32 %v390_v21, %v244_v46  ;;  %vm247_vm12 = vcmp.lt.f32.partialorder %v246_v52, 0.0004427343 }
  0xae   : > { %v392_v24 = vpop.eup %391 }
  0xaf   : > { %v254_v25 = vmul.f32 %v392_v24, %v231_v22  ;;  %v394_v26 = vpop.eup %393  ;;  %vm259_vm2 = vweird.f32 %v392_v24 }
  0xb0   : > { %v269_v30 = vmul.f32 %v394_v26, %v240_v23  ;;  %v396_v36 = vpop.eup %395  ;;  %vm274_vm4 = vweird.f32 %v394_v26  ;;  %vm260_vm5 = vmor %vm258_vm3, %vm259_vm2 }
  0xb1   : > { %v255_v29 = vsub.f32 1.0, %v254_v25  ;;  %v398_v43 = vpop.eup %397  ;;  %v233_v47 = vmul.f32 0.6931472, %v396_v36  ;;  %vm275_vm8 = vmor %vm273_vm6, %vm274_vm4 }
  0xb2   : > { %v270_v35 = vsub.f32 1.0, %v269_v30  ;;  %v242_v55 = vmul.f32 0.6931472, %v398_v43 }
  0xb3   : > { %v256_v33 = vmul.f32 %v392_v24, %v255_v29  ;;  %v239_v59 = vsel %vm474_vm10, %v236_v50, %v233_v47 }
  0xb4   : > { %v271_v41 = vmul.f32 %v394_v26, %v270_v35  ;;  %v248_v2 = vsel %vm247_vm12, %v245_v61, %v242_v55  ;;  %v249_v4 = vadd.f32 %v239_v59, %v229_v63 }
  0xb5   : > { %v257_v40 = vadd.f32 %v392_v24, %v256_v33  ;;  %v250_v8 = vadd.f32 %v248_v2, %v230_v1 }
  0xb6   : > { %v272_v49 = vadd.f32 %v394_v26, %v271_v41 }
  0xb7   : > { %v261_v48 = vsel %vm260_vm5, %v392_v24, %v257_v40 }
  0xb8   : > { %v266_v51 = vsel %vm263_vm7, %v265_v45, %v261_v48  ;;  %v276_v56 = vsel %vm275_vm8, %v394_v26, %v272_v49 }
  0xb9   : > { %v285_v54 = vmul.f32 %v388_v20, %v266_v51  ;;  %v281_v58 = vsel %vm278_vm9, %v280_v53, %v276_v56 }
  0xba   : > { %v286_v62 = vmul.f32 %v390_v21, %v281_v58 }
  0xbb   : > { %v287_v60 = vsel %vm283_vm11, %v266_v51, %v285_v54 }
  0xbc   : > { %v289_v0 = vmul.f32 100.0, %v287_v60  ;;  %v288_v3 = vsel %vm284_vm13, %v281_v58, %v286_v62 }
  0xbd   : > { %v290_v6 = vmul.f32 100.0, %v288_v3 }
  0xbe   : > { %v291_v5 = vadd.f32 1.0, %v289_v0 }
  0xbf   : > { %v292_v9 = vadd.f32 1.0, %v290_v6 }
  0xc0   : > { %v296_v7 = vsel %vm295_vm14, %v249_v4, %v291_v5 }
  0xc1   : > { %299 = vst.msk [vmem:[%s172_s10] sm:$0xff] %vm298_vm15, %v296_v7  ;;  %v297_v10 = vsel %vm295_vm14, %v250_v8, %v292_v9 }
  0xc2   : > { %300 = vst.msk [vmem:[%s172_s10 + $0x8] sm:$0xff] %vm298_vm15, %v297_v10 }
  0xc3 PF: > { %s13_s12 = sadd.s32 1, %s405_s12  }
  0xc4   : > { %p10_p4 = scmp.ge.s32.totalorder %s13_s12, 6  }
  0xc6   :  { %12 = sbr.rel (!%p10_p4) target bundleno = 1 (0x1), region = 62 }

</bundles_post_ra>
